<compile_context>
chip_gen: v6e
topology: v6e:2x2x1
jax: 0.10.0
libtpu: 0.0.40
codegen_flags: <defaults>
</compile_context>

<pallas_src>
import jax
import jax.numpy as jnp
from jax.experimental import pallas as pl
from jax.experimental.pallas import tpu as pltpu

IN_SIZE = 20
HID = 100
OUT_SIZE = 1
BN_EPS = 1e-5
LEAKY_SLOPE = 0.01


def portfolio_kernel(x_ref, w1_ref, w2_ref, w3_ref, bn12_ref, bn3_ref, out_ref):
    x = x_ref[...]                                  # (B, IN_SIZE)
    B = x.shape[0]
    inv_b = 1.0 / float(B)

    def bn_cols(h, gamma, beta):
        # Train-mode BatchNorm over the batch dim as a fused scale/shift.
        # Cross-sublane sums are cheap XLU reduces; nothing else here uses the
        # XLU, so they stay off the (MXU) critical path.
        s = jnp.sum(h, axis=0, keepdims=True)                   # (1, F)
        sq = jnp.sum(h * h, axis=0, keepdims=True)              # (1, F)
        mean = s * inv_b
        var = jnp.maximum(sq * inv_b - mean * mean, 0.0)        # clamp f32 cancellation
        scale = gamma * jax.lax.rsqrt(var + BN_EPS)
        shift = beta - mean * scale
        return h * scale + shift

    # Block 1: Linear (bias folded away by train-mode BN) -> BN -> LeakyReLU
    h1 = jnp.dot(x, w1_ref[...], preferred_element_type=jnp.float32)
    h1 = bn_cols(h1, bn12_ref[0:1, :], bn12_ref[1:2, :])
    h1 = jnp.maximum(h1, LEAKY_SLOPE * h1)

    # Block 2: Linear -> BN -> LeakyReLU
    h2 = jnp.dot(h1, w2_ref[...], preferred_element_type=jnp.float32)
    h2 = bn_cols(h2, bn12_ref[2:3, :], bn12_ref[3:4, :])
    h2 = jnp.maximum(h2, LEAKY_SLOPE * h2)

    # Block 3: N=1 linear as a VPU multiply + lane reduction (no MXU waste).
    h3 = jnp.sum(h2 * w3_ref[...], axis=-1, keepdims=True)      # (B, 1)

    # BN over the single feature: scalar reductions only, no MXU round trips.
    s3 = jnp.sum(h3) * inv_b
    sq3 = jnp.sum(h3 * h3) * inv_b
    var3 = jnp.maximum(sq3 - s3 * s3, 0.0)
    scale3 = bn3_ref[0] * jax.lax.rsqrt(var3 + BN_EPS)
    shift3 = bn3_ref[1] - s3 * scale3
    y = jax.nn.sigmoid(h3 * scale3 + shift3)

    out_ref[...] = (y - 0.5) * 0.1


def prepare_params(params):
    """One-time packing of kernel-ready parameters (hoisted out of the per-call
    wrapper): weights in (in, out) layout, per-feature BN params in a single
    (4, HID) slab, BN3 scalars as a length-2 SMEM vector."""
    bn12 = jnp.stack(
        [params["g1"], params["be1"], params["g2"], params["be2"]], axis=0
    ).astype(jnp.float32)                                        # (4, HID)
    bn3 = jnp.stack([params["g3"], params["be3"]]).astype(jnp.float32)  # (2,)
    return dict(
        w1=params["w1"].astype(jnp.float32),
        w2=params["w2"].astype(jnp.float32),
        w3=params["w3"].astype(jnp.float32),                     # (1, HID) row form
        bn12=bn12,
        bn3=bn3,
    )


def portfolio_forward(x, prepared):
    """x: (B, 20) float32.  prepared: dict from prepare_params()."""
    B = x.shape[0]
    assert B >= 2, "train-mode BatchNorm needs at least 2 rows (PyTorch errors too)"

    vmem = pl.BlockSpec(memory_space=pltpu.MemorySpace.VMEM)
    smem = pl.BlockSpec(memory_space=pltpu.MemorySpace.SMEM)

    return pl.pallas_call(
        portfolio_kernel,
        out_shape=jax.ShapeDtypeStruct((B, OUT_SIZE), jnp.float32),
        in_specs=[vmem, vmem, vmem, vmem, vmem, smem],
        out_specs=vmem,
    )(x, prepared["w1"], prepared["w2"], prepared["w3"],
      prepared["bn12"], prepared["bn3"])


def init_params(key):
    """Deterministic parameter init (PyTorch Linear-style uniform bounds)."""
    ks = jax.random.split(key, 6)

    def linear_init(kw, kb, fan_in, fan_out):
        bound = 1.0 / jnp.sqrt(float(fan_in))
        # weights stored already transposed: (fan_in, fan_out)
        w = jax.random.uniform(kw, (fan_in, fan_out), jnp.float32, -bound, bound)
        b = jax.random.uniform(kb, (fan_out,), jnp.float32, -bound, bound)
        return w, b

    w1, b1 = linear_init(ks[0], ks[1], IN_SIZE, HID)
    w2, b2 = linear_init(ks[2], ks[3], HID, HID)
    w3c, b3 = linear_init(ks[4], ks[5], HID, OUT_SIZE)   # (HID, 1)

    return dict(
        w1=w1, b1=b1,
        g1=jnp.ones((HID,), jnp.float32), be1=jnp.zeros((HID,), jnp.float32),
        w2=w2, b2=b2,
        g2=jnp.ones((HID,), jnp.float32), be2=jnp.zeros((HID,), jnp.float32),
        w3=w3c.reshape(1, HID), b3=b3,                   # kernel uses the (1, HID) row form
        g3=jnp.float32(1.0), be3=jnp.float32(0.0),
    )


def reference_forward(x, p):
    """Pure-JAX reference, faithful to the PyTorch module (keeps Linear biases,
    which train-mode BN cancels -- this verifies the kernel's bias elision)."""
    def bn(h, g, b):
        m = jnp.mean(h, axis=0, keepdims=True)
        v = jnp.mean((h - m) ** 2, axis=0, keepdims=True)
        return g * (h - m) / jnp.sqrt(v + BN_EPS) + b

    h = x @ p["w1"] + p["b1"]
    h = bn(h, p["g1"], p["be1"])
    h = jnp.where(h >= 0, h, LEAKY_SLOPE * h)
    h = h @ p["w2"] + p["b2"]
    h = bn(h, p["g2"], p["be2"])
    h = jnp.where(h >= 0, h, LEAKY_SLOPE * h)
    h = h @ p["w3"].T + p["b3"]                          # (B, 1)
    h = bn(h, p["g3"], p["be3"])
    y = jax.nn.sigmoid(h)
    return (y - 0.5) * 0.1


if __name__ == "__main__":
    key = jax.random.PRNGKey(0)
    kx, kp = jax.random.split(key)

    B = 8  # small batch, multiple of 8 sublanes
    x = jax.random.normal(kx, (B, IN_SIZE), dtype=jnp.float32)
    params = init_params(kp)
    prepared = prepare_params(params)   # packing done once, outside the forward

    out = portfolio_forward(x, prepared)
    out = jax.block_until_ready(out)

    ref = reference_forward(x, params)
    assert out.shape == (B, OUT_SIZE)
    assert jnp.allclose(out, ref, atol=1e-5, rtol=1e-4), (out, ref)

    print("KERNEL_OK")
</pallas_src>

<mosaic_0001>
module attributes {stable_mosaic.version = 11 : i64} {
  func.func @portfolio_kernel(%arg0: memref<8x20xf32, #tpu.memory_space<vmem>>, %arg1: memref<20x100xf32, #tpu.memory_space<vmem>>, %arg2: memref<100x100xf32, #tpu.memory_space<vmem>>, %arg3: memref<1x100xf32, #tpu.memory_space<vmem>>, %arg4: memref<4x100xf32, #tpu.memory_space<vmem>>, %arg5: memref<2xf32, #tpu.memory_space<smem>>, %arg6: memref<8x1xf32, #tpu.memory_space<vmem>>) attributes {dimension_semantics = [], scalar_prefetch = 0 : i64, scratch_operands = 0 : i64, tpu.core_type = #tpu.core_type<tc>} {
    %c0 = arith.constant 0 : index
    %c0_0 = arith.constant 0 : index
    %0 = vector.load %arg0[%c0, %c0_0] : memref<8x20xf32, #tpu.memory_space<vmem>>, vector<8x20xf32>
    %c0_1 = arith.constant 0 : index
    %c0_2 = arith.constant 0 : index
    %1 = vector.load %arg1[%c0_1, %c0_2] : memref<20x100xf32, #tpu.memory_space<vmem>>, vector<20x100xf32>
    %cst = arith.constant dense<0.000000e+00> : vector<8x100xf32>
    %2 = tpu.matmul %0, %1, %cst {dimension_numbers = #tpu.dot_dimension_numbers<[1], [0], [0], [1], [0, 0, 1, 1], [], []>} : vector<8x20xf32>, vector<20x100xf32>, vector<8x100xf32> -> vector<8x100xf32>
    %c0_3 = arith.constant 0 : index
    %c0_4 = arith.constant 0 : index
    %3 = vector.load %arg4[%c0_3, %c0_4] : memref<4x100xf32, #tpu.memory_space<vmem>>, vector<1x100xf32>
    %c1 = arith.constant 1 : index
    %c0_5 = arith.constant 0 : index
    %4 = vector.load %arg4[%c1, %c0_5] : memref<4x100xf32, #tpu.memory_space<vmem>>, vector<1x100xf32>
    %cst_6 = arith.constant dense<0.000000e+00> : vector<100xf32>
    %5 = vector.multi_reduction <add>, %2, %cst_6 [0] : vector<8x100xf32> to vector<100xf32>
    %6 = vector.shape_cast %5 : vector<100xf32> to vector<1x100xf32>
    %7 = arith.mulf %2, %2 : vector<8x100xf32>
    %cst_7 = arith.constant dense<0.000000e+00> : vector<100xf32>
    %8 = vector.multi_reduction <add>, %7, %cst_7 [0] : vector<8x100xf32> to vector<100xf32>
    %9 = vector.shape_cast %8 : vector<100xf32> to vector<1x100xf32>
    %cst_8 = arith.constant 1.250000e-01 : f32
    %10 = vector.broadcast %cst_8 : f32 to vector<1x100xf32>
    %11 = arith.mulf %6, %10 : vector<1x100xf32>
    %cst_9 = arith.constant 1.250000e-01 : f32
    %12 = vector.broadcast %cst_9 : f32 to vector<1x100xf32>
    %13 = arith.mulf %9, %12 : vector<1x100xf32>
    %14 = arith.mulf %11, %11 : vector<1x100xf32>
    %15 = arith.subf %13, %14 : vector<1x100xf32>
    %cst_10 = arith.constant 0.000000e+00 : f32
    %16 = vector.broadcast %cst_10 : f32 to vector<1x100xf32>
    %17 = arith.maximumf %15, %16 : vector<1x100xf32>
    %cst_11 = arith.constant 9.99999974E-6 : f32
    %18 = vector.broadcast %cst_11 : f32 to vector<1x100xf32>
    %19 = arith.addf %17, %18 : vector<1x100xf32>
    %20 = math.rsqrt %19 : vector<1x100xf32>
    %21 = arith.mulf %3, %20 : vector<1x100xf32>
    %22 = arith.mulf %11, %21 : vector<1x100xf32>
    %23 = arith.subf %4, %22 : vector<1x100xf32>
    %24 = vector.broadcast %21 : vector<1x100xf32> to vector<8x100xf32>
    %25 = arith.mulf %2, %24 : vector<8x100xf32>
    %26 = vector.broadcast %23 : vector<1x100xf32> to vector<8x100xf32>
    %27 = arith.addf %25, %26 : vector<8x100xf32>
    %cst_12 = arith.constant 0.00999999977 : f32
    %28 = vector.broadcast %cst_12 : f32 to vector<8x100xf32>
    %29 = arith.mulf %28, %27 : vector<8x100xf32>
    %30 = arith.maximumf %27, %29 : vector<8x100xf32>
    %c0_13 = arith.constant 0 : index
    %c0_14 = arith.constant 0 : index
    %31 = vector.load %arg2[%c0_13, %c0_14] : memref<100x100xf32, #tpu.memory_space<vmem>>, vector<100x100xf32>
    %cst_15 = arith.constant dense<0.000000e+00> : vector<8x100xf32>
    %32 = tpu.matmul %30, %31, %cst_15 {dimension_numbers = #tpu.dot_dimension_numbers<[1], [0], [0], [1], [0, 0, 1, 1], [], []>} : vector<8x100xf32>, vector<100x100xf32>, vector<8x100xf32> -> vector<8x100xf32>
    %c2 = arith.constant 2 : index
    %c0_16 = arith.constant 0 : index
    %33 = vector.load %arg4[%c2, %c0_16] : memref<4x100xf32, #tpu.memory_space<vmem>>, vector<1x100xf32>
    %c3 = arith.constant 3 : index
    %c0_17 = arith.constant 0 : index
    %34 = vector.load %arg4[%c3, %c0_17] : memref<4x100xf32, #tpu.memory_space<vmem>>, vector<1x100xf32>
    %cst_18 = arith.constant dense<0.000000e+00> : vector<100xf32>
    %35 = vector.multi_reduction <add>, %32, %cst_18 [0] : vector<8x100xf32> to vector<100xf32>
    %36 = vector.shape_cast %35 : vector<100xf32> to vector<1x100xf32>
    %37 = arith.mulf %32, %32 : vector<8x100xf32>
    %cst_19 = arith.constant dense<0.000000e+00> : vector<100xf32>
    %38 = vector.multi_reduction <add>, %37, %cst_19 [0] : vector<8x100xf32> to vector<100xf32>
    %39 = vector.shape_cast %38 : vector<100xf32> to vector<1x100xf32>
    %cst_20 = arith.constant 1.250000e-01 : f32
    %40 = vector.broadcast %cst_20 : f32 to vector<1x100xf32>
    %41 = arith.mulf %36, %40 : vector<1x100xf32>
    %cst_21 = arith.constant 1.250000e-01 : f32
    %42 = vector.broadcast %cst_21 : f32 to vector<1x100xf32>
    %43 = arith.mulf %39, %42 : vector<1x100xf32>
    %44 = arith.mulf %41, %41 : vector<1x100xf32>
    %45 = arith.subf %43, %44 : vector<1x100xf32>
    %cst_22 = arith.constant 0.000000e+00 : f32
    %46 = vector.broadcast %cst_22 : f32 to vector<1x100xf32>
    %47 = arith.maximumf %45, %46 : vector<1x100xf32>
    %cst_23 = arith.constant 9.99999974E-6 : f32
    %48 = vector.broadcast %cst_23 : f32 to vector<1x100xf32>
    %49 = arith.addf %47, %48 : vector<1x100xf32>
    %50 = math.rsqrt %49 : vector<1x100xf32>
    %51 = arith.mulf %33, %50 : vector<1x100xf32>
    %52 = arith.mulf %41, %51 : vector<1x100xf32>
    %53 = arith.subf %34, %52 : vector<1x100xf32>
    %54 = vector.broadcast %51 : vector<1x100xf32> to vector<8x100xf32>
    %55 = arith.mulf %32, %54 : vector<8x100xf32>
    %56 = vector.broadcast %53 : vector<1x100xf32> to vector<8x100xf32>
    %57 = arith.addf %55, %56 : vector<8x100xf32>
    %cst_24 = arith.constant 0.00999999977 : f32
    %58 = vector.broadcast %cst_24 : f32 to vector<8x100xf32>
    %59 = arith.mulf %58, %57 : vector<8x100xf32>
    %60 = arith.maximumf %57, %59 : vector<8x100xf32>
    %c0_25 = arith.constant 0 : index
    %c0_26 = arith.constant 0 : index
    %61 = vector.load %arg3[%c0_25, %c0_26] : memref<1x100xf32, #tpu.memory_space<vmem>>, vector<1x100xf32>
    %62 = vector.broadcast %61 : vector<1x100xf32> to vector<8x100xf32>
    %63 = arith.mulf %60, %62 : vector<8x100xf32>
    %cst_27 = arith.constant dense<0.000000e+00> : vector<8xf32>
    %64 = vector.multi_reduction <add>, %63, %cst_27 [1] : vector<8x100xf32> to vector<8xf32>
    %65 = vector.shape_cast %64 : vector<8xf32> to vector<8x1xf32>
    %66 = vector.shape_cast %65 : vector<8x1xf32> to vector<1x8x1xf32>
    %cst_28 = arith.constant dense<0.000000e+00> : vector<1xf32>
    %67 = vector.multi_reduction <add>, %66, %cst_28 [1, 2] : vector<1x8x1xf32> to vector<1xf32>
    %68 = vector.shape_cast %67 : vector<1xf32> to vector<1x1x1xf32>
    %69 = vector.extract %68[0, 0, 0] : f32 from vector<1x1x1xf32>
    %cst_29 = arith.constant 1.250000e-01 : f32
    %70 = arith.mulf %69, %cst_29 : f32
    %71 = arith.mulf %65, %65 : vector<8x1xf32>
    %72 = vector.shape_cast %71 : vector<8x1xf32> to vector<1x8x1xf32>
    %cst_30 = arith.constant dense<0.000000e+00> : vector<1xf32>
    %73 = vector.multi_reduction <add>, %72, %cst_30 [1, 2] : vector<1x8x1xf32> to vector<1xf32>
    %74 = vector.shape_cast %73 : vector<1xf32> to vector<1x1x1xf32>
    %75 = vector.extract %74[0, 0, 0] : f32 from vector<1x1x1xf32>
    %cst_31 = arith.constant 1.250000e-01 : f32
    %76 = arith.mulf %75, %cst_31 : f32
    %77 = arith.mulf %70, %70 : f32
    %78 = arith.subf %76, %77 : f32
    %cst_32 = arith.constant 0.000000e+00 : f32
    %79 = arith.maximumf %78, %cst_32 : f32
    %c0_33 = arith.constant 0 : index
    %80 = memref.load %arg5[%c0_33] : memref<2xf32, #tpu.memory_space<smem>>
    %cst_34 = arith.constant 9.99999974E-6 : f32
    %81 = arith.addf %79, %cst_34 : f32
    %82 = math.rsqrt %81 : f32
    %83 = arith.mulf %80, %82 : f32
    %c1_35 = arith.constant 1 : index
    %84 = memref.load %arg5[%c1_35] : memref<2xf32, #tpu.memory_space<smem>>
    %85 = arith.mulf %70, %83 : f32
    %86 = arith.subf %84, %85 : f32
    %87 = vector.broadcast %83 : f32 to vector<8x1xf32>
    %88 = arith.mulf %65, %87 : vector<8x1xf32>
    %89 = vector.broadcast %86 : f32 to vector<8x1xf32>
    %90 = arith.addf %88, %89 : vector<8x1xf32>
    %91 = arith.negf %90 : vector<8x1xf32>
    %92 = math.exp %91 : vector<8x1xf32>
    %cst_36 = arith.constant 1.000000e+00 : f32
    %93 = vector.broadcast %cst_36 : f32 to vector<8x1xf32>
    %94 = arith.addf %93, %92 : vector<8x1xf32>
    %95 = arith.divf %93, %94 : vector<8x1xf32>
    %cst_37 = arith.constant 5.000000e-01 : f32
    %96 = vector.broadcast %cst_37 : f32 to vector<8x1xf32>
    %97 = arith.subf %95, %96 : vector<8x1xf32>
    %cst_38 = arith.constant 1.000000e-01 : f32
    %98 = vector.broadcast %cst_38 : f32 to vector<8x1xf32>
    %99 = arith.mulf %97, %98 : vector<8x1xf32>
    %c0_39 = arith.constant 0 : index
    %c0_40 = arith.constant 0 : index
    %100 = vector.load %arg6[%c0_39, %c0_40] : memref<8x1xf32, #tpu.memory_space<vmem>>, vector<8x1xf32>
    tpu.vector_store %arg6[%c0_39, %c0_40], %99 {strides = array<i32>} : memref<8x1xf32, #tpu.memory_space<vmem>>, vector<8x1xf32>,
    return
  }
}

</mosaic_0001>

<bundles_post_ra>
// kernel: tpu_custom_call.1
= control target key start
LH: loop header
LB: loop body
LE: loop exit
PB: predicated region body
PF: predicated region fallthrough
CT: control target
= control target key end

     0   :  { %11 = vsyncpa [#allocation3], 0  ;;  %s644_s0 = inlined_call_operand.hbm [shape: f32[8,20], index: 0, kind: input, shape index: {}]   ;;  %s645_s1 = inlined_call_operand.hbm [shape: f32[20,100], index: 1, kind: input, shape index: {}]   ;;  %s646_s2 = inlined_call_operand.hbm [shape: f32[100,100], index: 2, kind: input, shape index: {}]   ;;  %s647_s3 = inlined_call_operand.vmem [shape: f32[1,100], index: 3, kind: input, shape index: {}]   ;;  %s648_s4 = inlined_call_operand.vmem [shape: f32[4,100], index: 4, kind: input, shape index: {}]   ;;  %s649_s5 = inlined_call_operand.vmem [shape: f32[2], index: 5, kind: input, shape index: {}]   ;;  %s650_s6 = inlined_call_operand.vmem [shape: f32[8,1], index: 6, kind: output, shape index: {}]  }
   0x1   :  { %12 = vsyncpa [#allocation6], 0 }
   0x2   :  { %13 = vsyncpa [#allocation4], 0  ;;  %s559_s21 = smov [#allocation5]  }
   0x3   :  { %s29_s22 = sshll.u32 %s559_s21, 4  ;;  %s30_s22 = int_to_ptr.vmem [resolvable:$true] %s29_s22 }
   0x4   :  { %s489_s23 = scalar_lea.vmem %s30_s22, 384  ;;  %p494_p1 = scmp.lt.s32.totalorder %s30_s22, %s30_s22 }
   0x5   :  { %p490_p0 = scmp.ne.s32.totalorder %s30_s22, %s489_s23  ;;  %p495_p2 = scmp.lt.s32.totalorder %s489_s23, %s489_s23 }
   0x7   :  { %p496_p3 = por %p495_p2, %p494_p1 }
   0x9   :  { %p497_p4 = pnand %p496_p3, %p490_p0 }
   0xb   :  { %500 = shalt.err (!%p497_p4)
}
   0xc   :  { %s560_s24 = smov 128   ;;  %s561_s25 = smov 8  }
   0xd   :  { %35 = dma.hbm_to_vmem [thread:$0]  %s645_s1, 384, %s30_s22, [#allocation6], %s560_s24, %s560_s24, %s561_s25  }
   0xe   :  { %s562_s28 = smov [#allocation2]   ;;  %s563_s30 = smov [#allocation7]  }
   0xf   :  { %s20_s29 = sshll.u32 %s562_s28, 4  ;;  %s41_s7 = sshll.u32 %s563_s30, 4  ;;  %s21_s29 = int_to_ptr.vmem [resolvable:$true] %s20_s29  ;;  %s42_s7 = int_to_ptr.vmem [resolvable:$true] %s41_s7 }
  0x10   :  { %s509_s8 = scalar_lea.vmem %s21_s29, 128  ;;  %p514_p6 = scmp.lt.s32.totalorder %s21_s29, %s21_s29 }
  0x11   :  { %p510_p5 = scmp.ne.s32.totalorder %s21_s29, %s509_s8  ;;  %p515_p7 = scmp.lt.s32.totalorder %s509_s8, %s509_s8 }
  0x13   :  { %p516_p8 = por %p515_p7, %p514_p6 }
  0x15   :  { %p517_p9 = pnand %p516_p8, %p510_p5 }
  0x17   :  { %520 = shalt.err (!%p517_p9)
}
  0x18   :  { %23 = dma.hbm_to_vmem [thread:$0]  %s644_s0, 128, %s21_s29, [#allocation3]  }
  0x19   :  { %s58_s1 = sshll.u32 %s649_s5, 4  ;;  %s529_s13 = scalar_lea.vmem %s42_s7, 1664  ;;  %s59_s1 = int_to_ptr.vmem [resolvable:$true] %s58_s1 }
  0x1a   :  { %p530_p10 = scmp.ne.s32.totalorder %s42_s7, %s529_s13  ;;  %p534_p11 = scmp.lt.s32.totalorder %s42_s7, %s42_s7 }
  0x1b   :  { %p535_p12 = scmp.lt.s32.totalorder %s529_s13, %s529_s13 }
  0x1d   :  { %p536_p13 = por %p535_p12, %p534_p11 }
  0x1f   :  { %p537_p0 = pnand %p536_p13, %p530_p10 }
  0x21   :  { %540 = shalt.err (!%p537_p0)
}
  0x22   :  { %47 = dma.hbm_to_vmem [thread:$0]  %s646_s2, 1664, %s42_s7, [#allocation6], %s560_s24, %s560_s24, %s561_s25  }
  0x23   :  { %s541_s16 = scalar_lea.vmem %s59_s1, 16  ;;  %p546_p2 = scmp.lt.s32.totalorder %s59_s1, %s59_s1 }
  0x24   :  { %p542_p1 = scmp.ne.s32.totalorder %s59_s1, %s541_s16  ;;  %p547_p3 = scmp.lt.s32.totalorder %s541_s16, %s541_s16 }
  0x26   :  { %p548_p4 = por %p547_p3, %p546_p2 }
  0x28   :  { %p549_p5 = pnand %p548_p4, %p542_p1 }
  0x2a   :  { %552 = shalt.err (!%p549_p5)
}
  0x2b   :  { %s564_s0 = smov [#allocation8]  }
  0x2c   :  { %61 = dma.vmem_to_smem %s59_s1, 16, %s564_s0, [#allocation4]  }
  0x2d   :  { %553 = dma.done.wait [#allocation3], 128  }
  0x2e   :  { %554 = vsyncadd [#allocation3], 4294967168 }
  0x2f   :  { %555 = dma.done.wait [#allocation6], 2048  }
  0x30   :  { %556 = vsyncadd [#allocation6], 4294965248 }
  0x31   :  { %557 = dma.done.wait [#allocation4], 16  }
  0x32   :  { %558 = vsyncadd [#allocation4], 4294967280 }
  0x33   :  { %74 = sfence }
  0x34   :  { %v78_v0 = vld [vmem:[#allocation5 + $0x10] sm:$0xf]  ;;  %vm83_vm0 = vcmask 1043456   ;;  %v565_v1 = vmov 0.0   ;;  %v77_v2 = vld [vmem:[#allocation5 + $0x8] sm:$0xff]  ;;  %vm566_vm1 = vmmov 0   ;;  %v185_v41 = vlaneseq }
  0x35   :  { %418 = vmatprep.subr.mxu0 %v565_v1  ;;  %427 = vmatprep.subr.mxu1 %v565_v1  ;;  %v76_v3 = vld [vmem:[#allocation5] sm:$0xff]  ;;  %v75_v4 = vld [vmem:[#allocation2] sm:$0xff]  ;;  %vm79_vm2 = vcmask 162816   ;;  %v208_v6 = vld [vmem:[#allocation7 + $0x58] sm:$0xff]  ;;  %vm159_vm3 = vcmask 818176   ;;  %vm336_vm4 = vcmask 7168  }
  0x36   :  { %419 = vmatpush3.msk.msra.mxu0 %vm83_vm0, %v78_v0  ;;  %424 = vmatprep.mubr.msk.f32.mxu0 %vm566_vm1, %v565_v1  ;;  %v209_v5 = vld [vmem:[#allocation7 + $0x60] sm:$0xf]  ;;  %v207_v7 = vld [vmem:[#allocation7 + $0x50] sm:$0xff]  ;;  %v206_v8 = vld [vmem:[#allocation7 + $0x48] sm:$0xff]  ;;  %v186_v42 = vshrl.u32 %v185_v41, 7  ;;  %s567_s29 = smov 0.0  }
  0x37   :  { %420 = vmatprep.subr.mxu0 %v565_v1  ;;  %453 = vmatprep.mubr.msk.f32.mxu1 %vm566_vm1, %v565_v1  ;;  %v205_v9 = vld [vmem:[#allocation7 + $0x40] sm:$0xff]  ;;  %v204_v10 = vld [vmem:[#allocation7 + $0x38] sm:$0xff]  ;;  %v203_v11 = vld [vmem:[#allocation7 + $0x30] sm:$0xff]  ;;  %s363_s8 = sld [smem:[#allocation8]] }
  0x38   :  { %421 = vmatpush3.msra.mxu0 %v77_v2  ;;  %428 = vmatpush3.msk.msra.mxu1 %vm83_vm0, %v209_v5  ;;  %v202_v12 = vld [vmem:[#allocation7 + $0x28] sm:$0xff]  ;;  %v201_v13 = vld [vmem:[#allocation7 + $0x20] sm:$0xff]  ;;  %v200_v14 = vld [vmem:[#allocation7 + $0x18] sm:$0xff]  ;;  %v187_v44 = vsub.s32 0, %v186_v42  ;;  %s397_s9 = sld [smem:[#allocation8 + $0x1]] }
  0x39   :  { %422 = vmatprep.subr.mxu0 %v565_v1  ;;  %429 = vmatprep.subr.mxu1 %v565_v1  ;;  %v199_v15 = vld [vmem:[#allocation7 + $0x10] sm:$0xff]  ;;  %v198_v16 = vld [vmem:[#allocation7 + $0x8] sm:$0xff]  ;;  %v197_v17 = vld [vmem:[#allocation7] sm:$0xff] }
  0x3a   :  { %423 = vmatpush3.msra.mxu0 %v76_v3  ;;  %430 = vmatpush3.msra.mxu1 %v208_v6  ;;  %v157_v43 = vld [vmem:[%s648_s4] sm:$0x1]  ;;  %v158_v47 = vld [vmem:[%s648_s4 + $0x1] sm:$0x1] }
  0x3b   :  { %425 = vmatmul.mubr.msk.f32.vlgmr.msra.gmra.mxu0 %vm79_vm2, %v75_v4  ;;  %431 = vmatprep.subr.mxu1 %v565_v1 }
  0x3c   :  { %432 = vmatpush3.msra.mxu1 %v207_v7 }
  0x3d   :  { %433 = vmatprep.subr.mxu1 %v565_v1 }
  0x3e   :  { %434 = vmatpush3.msra.mxu1 %v206_v8 }
  0x3f   :  { %435 = vmatprep.subr.mxu1 %v565_v1 }
  0x40   :  { %436 = vmatpush3.msra.mxu1 %v205_v9 }
  0x41   :  { %437 = vmatprep.subr.mxu1 %v565_v1 }
  0x42   :  { %438 = vmatpush3.msra.mxu1 %v204_v10 }
  0x43   :  { %439 = vmatprep.subr.mxu1 %v565_v1 }
  0x44   :  { %440 = vmatpush3.msra.mxu1 %v203_v11 }
  0x45   :  { %441 = vmatprep.subr.mxu1 %v565_v1 }
  0x46   :  { %442 = vmatpush3.msra.mxu1 %v202_v12 }
  0x47   :  { %443 = vmatprep.subr.mxu1 %v565_v1 }
  0x48   :  { %444 = vmatpush3.msra.mxu1 %v201_v13 }
  0x49   :  { %445 = vmatprep.subr.mxu1 %v565_v1 }
  0x4a   :  { %446 = vmatpush3.msra.mxu1 %v200_v14 }
  0x4b   :  { %447 = vmatprep.subr.mxu1 %v565_v1 }
  0x4c   :  { %448 = vmatpush3.msra.mxu1 %v199_v15  ;;  %v286_v15 = vld [vmem:[%s648_s4 + $0x2] sm:$0x1] }
  0x4d   :  { %449 = vmatprep.subr.mxu1 %v565_v1 }
  0x4e   :  { %450 = vmatpush3.msra.mxu1 %v198_v16 }
  0x4f   :  { %451 = vmatprep.subr.mxu1 %v565_v1 }
  0x50   :  { %452 = vmatpush3.msra.mxu1 %v197_v17 }
  0xfb   :  { %v153_v18 = vpop.f32.mrf.mxu0 }
  0xfc   :  { %v160_v19 = vsel %vm159_vm3, %v153_v18, 0.0  ;;  %v167_v20 = vmul.f32 %v153_v18, %v153_v18 }
  0xfd   :  { %v161_v21 = vrot.slane %v160_v19, 4  ;;  %v426_v22 = vpop.f32.mrf.mxu0 }
  0xfe   :  { %v168_v23 = vsel %vm159_vm3, %v167_v20, 0.0 }
  0xff   :  { %v162_v24 = vadd.f32 %v161_v21, %v160_v19  ;;  %v169_v25 = vrot.slane %v168_v23, 4 }
 0x101   :  { %v163_v26 = vrot.slane %v162_v24, 2  ;;  %v170_v27 = vadd.f32 %v169_v25, %v168_v23 }
 0x103   :  { %v164_v28 = vadd.f32 %v163_v26, %v162_v24  ;;  %v171_v29 = vrot.slane %v170_v27, 2  ;;  %v396_v26 = vld [vmem:[%s647_s3] ss:$0 sm:$0xff] }
 0x105   :  { %v165_v30 = vrot.slane %v164_v28, 1  ;;  %v172_v31 = vadd.f32 %v171_v29, %v170_v27 }
 0x107   :  { %v166_v32 = vadd.f32 %v165_v30, %v164_v28  ;;  %v173_v33 = vrot.slane %v172_v31, 1 }
 0x109   :  { %v174_v34 = vadd.f32 %v173_v33, %v172_v31  ;;  %v175_v35 = vmul.f32 0.125, %v166_v32 }
 0x10b   :  { %v176_v36 = vmul.f32 0.125, %v174_v34  ;;  %v177_v37 = vmul.f32 %v175_v35, %v175_v35 }
 0x10d   :  { %v178_v38 = vsub.f32 %v176_v36, %v177_v37 }
 0x10f   :  { %v179_v39 = vmax.f32 %v178_v38, 0.0 }
 0x111   :  { %v180_v40 = vadd.f32 1e-05, %v179_v39 }
 0x113   :  { %471 = vrsqrt.f32 %v180_v40 }
 0x120   :  { %v472_v45 = vpop.eup %471 }
 0x121   :  { %v182_v46 = vmul.f32 %v472_v45, %v157_v43 }
 0x123   :  { %v183_v48 = vmul.f32 %v182_v46, %v175_v35  ;;  %v188_v49 = vrot.slane %v182_v46, %v187_v44 }
 0x125   :  { %v184_v50 = vsub.f32 %v158_v47, %v183_v48  ;;  %v189_v51 = vmul.f32 %v188_v49, %v153_v18  ;;  %v287_v18 = vld [vmem:[%s648_s4 + $0x3] sm:$0x1] }
 0x127   :  { %v193_v52 = vrot.slane %v184_v50, %v187_v44 }
 0x129   :  { %v194_v53 = vadd.f32 %v193_v52, %v189_v51 }
 0x12b   :  { %v195_v54 = vmul.f32 0.01, %v194_v53 }
 0x12d   :  { %v196_v55 = vmax.f32 %v194_v53, %v195_v54 }
 0x12f   :  { %454 = vmatmul.mubr.msk.f32.vlgmr.msra.gmra.mxu1 %vm159_vm3, %v196_v55 }
 0x1ef   :  { %v282_v56 = vpop.f32.mrf.mxu1 }
 0x1f0   :  { %v288_v57 = vsel %vm159_vm3, %v282_v56, 0.0  ;;  %v295_v58 = vmul.f32 %v282_v56, %v282_v56 }
 0x1f1   :  { %v289_v59 = vrot.slane %v288_v57, 4  ;;  %v455_v60 = vpop.f32.mrf.mxu1 }
 0x1f2   :  { %v296_v61 = vsel %vm159_vm3, %v295_v58, 0.0 }
 0x1f3   :  { %v290_v62 = vadd.f32 %v289_v59, %v288_v57  ;;  %v297_v63 = vrot.slane %v296_v61, 4 }
 0x1f5   :  { %v291_v0 = vrot.slane %v290_v62, 2  ;;  %v298_v1 = vadd.f32 %v297_v63, %v296_v61 }
 0x1f7   :  { %v292_v2 = vadd.f32 %v291_v0, %v290_v62  ;;  %v299_v3 = vrot.slane %v298_v1, 2 }
 0x1f9   :  { %v293_v4 = vrot.slane %v292_v2, 1  ;;  %v300_v5 = vadd.f32 %v299_v3, %v298_v1 }
 0x1fb   :  { %v294_v6 = vadd.f32 %v293_v4, %v292_v2  ;;  %v301_v7 = vrot.slane %v300_v5, 1 }
 0x1fd   :  { %v302_v8 = vadd.f32 %v301_v7, %v300_v5  ;;  %v303_v9 = vmul.f32 0.125, %v294_v6 }
 0x1ff   :  { %v304_v10 = vmul.f32 0.125, %v302_v8  ;;  %v305_v11 = vmul.f32 %v303_v9, %v303_v9 }
 0x201   :  { %v306_v12 = vsub.f32 %v304_v10, %v305_v11 }
 0x203   :  { %v307_v13 = vmax.f32 %v306_v12, 0.0 }
 0x205   :  { %v308_v14 = vadd.f32 1e-05, %v307_v13 }
 0x207   :  { %473 = vrsqrt.f32 %v308_v14 }
 0x214   :  { %v474_v16 = vpop.eup %473 }
 0x215   :  { %v310_v17 = vmul.f32 %v474_v16, %v286_v15 }
 0x217   :  { %v311_v19 = vmul.f32 %v310_v17, %v303_v9  ;;  %v316_v20 = vrot.slane %v310_v17, %v187_v44 }
 0x219   :  { %v312_v21 = vsub.f32 %v287_v18, %v311_v19  ;;  %v317_v22 = vmul.f32 %v316_v20, %v282_v56 }
 0x21b   :  { %v321_v23 = vrot.slane %v312_v21, %v187_v44 }
 0x21d   :  { %v322_v24 = vadd.f32 %v321_v23, %v317_v22 }
 0x21f   :  { %v323_v25 = vmul.f32 0.01, %v322_v24 }
 0x221   :  { %v324_v27 = vmax.f32 %v322_v24, %v323_v25 }
 0x223   :  { %v332_v28 = vmul.f32 %v396_v26, %v324_v27 }
 0x225   :  { %v333_v29 = vsel %vm159_vm3, %v332_v28, 0.0 }
 0x226   :  { %334 = vadd.xlane.f32.xlu0 %v333_v29 }
 0x2af   :  { %v335_v30 = vpop.xlane.xlu0 %334 }
 0x2b0   :  { %v337_v31 = vsel %vm336_vm4, %v335_v30, 0.0  ;;  %v348_v32 = vmul.f32 %v335_v30, %v335_v30 }
 0x2b1   :  { %338 = vadd.xlane.f32.xlu0 %v337_v31 }
 0x2b2   :  { %v349_v33 = vsel %vm336_vm4, %v348_v32, 0.0 }
 0x2b3   :  { %350 = vadd.xlane.f32.xlu1 %v349_v33 }
 0x33a   :  { %v339_v34 = vpop.xlane.xlu0 %338 }
 0x33b   :  { %v340_v35 = vrot.slane %v339_v34, 4 }
 0x33c   :  { %v351_v36 = vpop.xlane.xlu1 %350 }
 0x33d   :  { %v341_v37 = vadd.f32 %v340_v35, %v339_v34  ;;  %v352_v38 = vrot.slane %v351_v36, 4 }
 0x33f   :  { %v342_v39 = vrot.slane %v341_v37, 2  ;;  %v353_v40 = vadd.f32 %v352_v38, %v351_v36 }
 0x341   :  { %v354_v41 = vrot.slane %v353_v40, 2  ;;  %v343_v42 = vadd.f32 %v342_v39, %v341_v37 }
 0x343   :  { %v355_v43 = vadd.f32 %v354_v41, %v353_v40  ;;  %v344_v44 = vrot.slane %v343_v42, 1 }
 0x345   :  { %v345_v45 = vadd.f32 %v344_v44, %v343_v42  ;;  %v356_v46 = vrot.slane %v355_v43, 1 }
 0x347   :  { %456 = vpush %v345_v45  ;;  %v357_v47 = vadd.f32 %v356_v46, %v355_v43 }
 0x349   :  { %458 = vpush %v357_v47 }
 0x378   :  { %s457_s3 = spop %456 }
 0x379   :  { %s347_s4 = smul.f32 0.125, %s457_s3 }
 0x37a   :  { %s459_s25 = spop %458 }
 0x37b   :  { %s360_s26 = smul.f32 %s347_s4, %s347_s4 }
 0x37c   :  { %s359_s27 = smul.f32 0.125, %s459_s25 }
 0x37e   :  { %s361_s28 = ssub.f32 %s359_s27, %s360_s26 }
 0x380   :  { %s362_s30 = smax.f32 %s567_s29, %s361_s28 }
 0x381   :  { %s364_s7 = sadd.f32 1e-05, %s362_s30 }
 0x383   :  { %v365_v48 = vstv %s364_s7 }
 0x384   :  { %475 = vrsqrt.f32 %v365_v48 }
 0x391   :  { %v476_v49 = vpop.eup %475 }
 0x392   :  { %460 = vpush %v476_v49 }
 0x3c3   :  { %s461_s10 = spop %460 }
 0x3c4   :  { %s368_s11 = smul.f32 %s461_s10, %s363_s8 }
 0x3c6   :  { %s370_s12 = smul.f32 %s368_s11, %s347_s4  ;;  %v372_v50 = vstv %s368_s11 }
 0x3c7   :  { %v373_v51 = vmul.f32 %v372_v50, %v335_v30 }
 0x3c8   :  { %s371_s1 = ssub.f32 %s397_s9, %s370_s12 }
 0x3ca   :  { %v374_v52 = vstv %s371_s1 }
 0x3cb   :  { %v375_v53 = vadd.f32 %v374_v52, %v373_v51 }
 0x3cd   :  { %v398_v54 = vmul.f32 -1.442695, %v375_v53 }
 0x3cf   :  { %477 = vpow2.f32 %v398_v54 }
 0x3dc   :  { %v478_v55 = vpop.eup %477 }
 0x3dd   :  { %v379_v56 = vadd.f32 1.0, %v478_v55 }
 0x3df   :  { %479 = vrcp.f32 %v379_v56 }
 0x3ec   :  { %v480_v57 = vpop.eup %479 }
 0x3ed   :  { %v399_v58 = vadd.f32 -0.5, %v480_v57 }
 0x3ef   :  { %v383_v59 = vmul.f32 0.1, %v399_v58 }
 0x3f1   :  { %384 = vst.msk [vmem:[%s650_s6] sm:$0xff] %vm336_vm4, %v383_v59 }
 0x3f2   :  { %389 = vsyncpa [#allocation3], 1 }
 0x3f3   :  { %390 = vsyncpa [#allocation6], 1 }
 0x3f4   :  { %391 = vsyncpa [#allocation4], 1 }

</bundles_post_ra>
